<compile_context>
chip_gen: v5e
topology: v5e:2x2
jax: 0.10.0
libtpu: 0.0.40
codegen_flags: <defaults>
</compile_context>

<pallas_src>
import jax
import jax.numpy as jnp
from jax.experimental import pallas as pl
from jax.experimental.pallas import tpu as pltpu


def _drop_path_kernel(scale_ref, x_ref, o_ref):
    # scale_ref: (B, 1) per-sample scale (0 or 1/keep_prob), VMEM-resident.
    # x_ref/o_ref: (B, TN) lane-dense tile of the flattened activations.
    o_ref[...] = x_ref[...] * scale_ref[...]


def _sample_scale(key, batch, keep_prob, scale_by_keep, dtype):
    """Per-sample DropPath scale: Bernoulli(keep_prob) [, / keep_prob]."""
    keep = jax.random.bernoulli(key, p=keep_prob, shape=(batch, 1))
    scale = keep.astype(jnp.float32)
    if scale_by_keep and keep_prob > 0.0:
        scale = scale / keep_prob
    return scale.astype(dtype)


def _pick_lane_tile(n, batch, itemsize, block_bytes):
    """Largest multiple-of-128 divisor of n whose (batch, tile) block stays
    under ~block_bytes; falls back to the full feature row (always legal)."""
    if n % 128 != 0 or batch * n * itemsize <= block_bytes:
        return n
    max_tn = max(128, (block_bytes // (batch * itemsize)) // 128 * 128)
    best = None
    t = 128
    limit = min(n, max_tn)
    while t <= limit:
        if n % t == 0:
            best = t
        t += 128
    return best if best is not None else n


def drop_path(x, key, drop_prob, *, training=True, scale_by_keep=True,
              block_bytes=4 << 20):
    """Pallas DropPath.  x: (B, ...); returns array of the same shape/dtype."""
    if drop_prob == 0.0 or not training:
        return x
    keep_prob = 1.0 - drop_prob
    B = x.shape[0]
    n = 1
    for d in x.shape[1:]:
        n *= d

    scale = _sample_scale(key, B, keep_prob, scale_by_keep, x.dtype)
    x2 = x.reshape(B, n)                                   # free view
    tn = _pick_lane_tile(n, B, jnp.dtype(x.dtype).itemsize, block_bytes)

    out = pl.pallas_call(
        _drop_path_kernel,
        out_shape=jax.ShapeDtypeStruct((B, n), x.dtype),
        grid_spec=pltpu.PrefetchScalarGridSpec(
            num_scalar_prefetch=0,
            grid=(n // tn,),
            in_specs=[
                pl.BlockSpec((B, 1), lambda j: (0, 0)),    # per-sample scale (resident)
                pl.BlockSpec((B, tn), lambda j: (0, j)),   # x tile (lane-dense)
            ],
            out_specs=pl.BlockSpec((B, tn), lambda j: (0, j)),
        ),
        compiler_params=pltpu.CompilerParams(
            dimension_semantics=("parallel",),
        ),
    )(scale, x2)

    return out.reshape(x.shape)


if __name__ == "__main__":
    # Small deterministic setup: tokens (B, L, C) = (2, 64, 128), drop_prob=0.25.
    B, L, C = 2, 64, 128
    drop_prob = 0.25

    key = jax.random.PRNGKey(0)
    kx, kmask = jax.random.split(key)
    x = jax.random.normal(kx, (B, L, C), dtype=jnp.float32)

    # Training path (kernel runs).
    out = drop_path(x, kmask, drop_prob, training=True, scale_by_keep=True)
    out = jax.block_until_ready(out)

    # Pure-JAX reference with the identical per-sample mask (same key).
    scale = _sample_scale(kmask, B, 1.0 - drop_prob, True, x.dtype)
    ref = x * scale.reshape(B, 1, 1)

    assert out.shape == x.shape, out.shape
    assert out.dtype == x.dtype, out.dtype
    assert jnp.allclose(out, ref, atol=1e-6, rtol=1e-6), "mismatch vs reference"

    # Exercise the multi-step (tiled) grid path with a smaller block budget.
    out_tiled = drop_path(x, kmask, drop_prob, training=True, block_bytes=32 << 10)
    out_tiled = jax.block_until_ready(out_tiled)
    assert jnp.allclose(out_tiled, ref, atol=1e-6, rtol=1e-6), "tiled mismatch"

    # Eval mode and drop_prob == 0 are the identity, exactly as in PyTorch.
    assert jnp.array_equal(drop_path(x, kmask, drop_prob, training=False), x)
    assert jnp.array_equal(drop_path(x, kmask, 0.0, training=True), x)

    print("KERNEL_OK")
</pallas_src>

<mosaic_0001>
module attributes {stable_mosaic.version = 11 : i64} {
  func.func @_drop_path_kernel(%arg0: i32, %arg1: memref<2x1xf32, #tpu.memory_space<vmem>>, %arg2: memref<2x8192xf32, #tpu.memory_space<vmem>>, %arg3: memref<2x8192xf32, #tpu.memory_space<vmem>>) attributes {dimension_semantics = [#tpu.dimension_semantics<parallel>], iteration_bounds = array<i64: 1>, scalar_prefetch = 0 : i64, scratch_operands = 0 : i64, tpu.core_type = #tpu.core_type<tc>, window_params = [{pipeline_mode = #tpu.pipeline_mode<synchronous>, transform_indices = @transform_0, window_bounds = array<i64: 2, 1>}, {transform_indices = @transform_1, window_bounds = array<i64: 2, 8192>}, {transform_indices = @transform_2, window_bounds = array<i64: 2, 8192>}]} {
    %c0 = arith.constant 0 : index
    %c0_0 = arith.constant 0 : index
    %0 = vector.load %arg2[%c0, %c0_0] : memref<2x8192xf32, #tpu.memory_space<vmem>>, vector<2x8192xf32>
    %c0_1 = arith.constant 0 : index
    %c0_2 = arith.constant 0 : index
    %1 = vector.load %arg1[%c0_1, %c0_2] : memref<2x1xf32, #tpu.memory_space<vmem>>, vector<2x1xf32>
    %2 = vector.broadcast %1 : vector<2x1xf32> to vector<2x8192xf32>
    %3 = arith.mulf %0, %2 : vector<2x8192xf32>
    %c0_3 = arith.constant 0 : index
    %c0_4 = arith.constant 0 : index
    %4 = vector.load %arg3[%c0_3, %c0_4] : memref<2x8192xf32, #tpu.memory_space<vmem>>, vector<2x8192xf32>
    tpu.vector_store %arg3[%c0_3, %c0_4], %3 {strides = array<i32>} : memref<2x8192xf32, #tpu.memory_space<vmem>>, vector<2x8192xf32>,
    return
  }
  func.func @transform_0(%arg0: i32) -> (i32, i32) {
    %c0_i32 = arith.constant 0 : i32
    %c0_i32_0 = arith.constant 0 : i32
    %c0_i32_1 = arith.constant 0 : i32
    return %c0_i32, %c0_i32_0 : i32, i32
  }
  func.func @transform_1(%arg0: i32) -> (i32, i32) {
    %c0_i32 = arith.constant 0 : i32
    %c0_i32_0 = arith.constant 0 : i32
    return %c0_i32, %arg0 : i32, i32
  }
  func.func @transform_2(%arg0: i32) -> (i32, i32) {
    %c0_i32 = arith.constant 0 : i32
    %c0_i32_0 = arith.constant 0 : i32
    return %c0_i32, %arg0 : i32, i32
  }
}

</mosaic_0001>

<bundles_post_ra>
// kernel: tpu_custom_call.1
= control target key start
LH: loop header
LB: loop body
LE: loop exit
PB: predicated region body
PF: predicated region fallthrough
CT: control target
= control target key end

     0   :  { %7 = vsyncpa [#allocation3], 0  ;;  %s186_s0 = inlined_call_operand.vmem [shape: f32[2,1], index: 0, kind: input, shape index: {}]   ;;  %s187_s1 = inlined_call_operand.hbm [shape: f32[2,8192], index: 1, kind: input, shape index: {}]   ;;  %s188_s2 = inlined_call_operand.hbm [shape: f32[2,8192], index: 2, kind: output, shape index: {}]  }
   0x1   :  { %8 = vsyncpa [#allocation4], 0  ;;  %s16_s11 = sshll.u32 %s187_s1, 4  ;;  %s158_s12 = smov [#allocation2]   ;;  %s17_s11 = int_to_ptr.hbm [resolvable:$true] %s16_s11 }
   0x2   :  { %s18_s13 = sshll.u32 %s158_s12, 4  ;;  %s19_s13 = int_to_ptr.vmem [resolvable:$true] %s18_s13 }
   0x3   :  { %21 = dma.hbm_to_vmem [thread:$0]  %s17_s11, 2048, %s19_s13, [#allocation3]  }
   0x4   :  { %154 = dma.done.wait [#allocation3], 2048  }
   0x5   :  { %155 = vsyncadd [#allocation3], 4294965248  ;;  %v159_v0 = vmov 0   ;;  %v42_v1 = vld [vmem:[%s186_s0] sm:$0x3]  ;;  %v27_v7 = vld [vmem:[#allocation2 + $0x8] sm:$0xff] }
   0x6   :  { %105 = vset.pattern.permute.xlu0 %v159_v0  ;;  %v160_v2 = vmov 269488144   ;;  %v26_v6 = vld [vmem:[#allocation2] sm:$0xff]  ;;  %v28_v8 = vld [vmem:[#allocation2 + $0x10] sm:$0xff]  ;;  %v29_v10 = vld [vmem:[#allocation2 + $0x18] sm:$0xff]  ;;  %s161_s0 = smov [#allocation5]  }
   0x7   :  { %45 = vperm.xlu0 %105, %v42_v1   ;;  %v48_v3 = vunpack.c.l.s4 %v160_v2  ;;  %v30_v11 = vld [vmem:[#allocation2 + $0x20] sm:$0xff]  ;;  %v31_v12 = vld [vmem:[#allocation2 + $0x28] sm:$0xff]  ;;  %v32_v16 = vld [vmem:[#allocation2 + $0x30] sm:$0xff]  ;;  %s89_s1 = sshll.u32 %s161_s0, 4  ;;  %s91_s18 = sshll.u32 %s188_s2, 4  ;;  %s90_s1 = int_to_ptr.vmem [resolvable:$true] %s89_s1  ;;  %s92_s18 = int_to_ptr.hbm [resolvable:$true] %s91_s18 }
   0x8   :  { %v33_v18 = vld [vmem:[#allocation2 + $0x38] sm:$0xff]  ;;  %v34_v20 = vld [vmem:[#allocation2 + $0x40] sm:$0xff]  ;;  %v35_v22 = vld [vmem:[#allocation2 + $0x48] sm:$0xff] }
   0x9   :  { %v49_v4 = vunpack.c.0.s8 %v48_v3  ;;  %v36_v24 = vld [vmem:[#allocation2 + $0x50] sm:$0xff]  ;;  %v37_v26 = vld [vmem:[#allocation2 + $0x58] sm:$0xff]  ;;  %v38_v28 = vld [vmem:[#allocation2 + $0x60] sm:$0xff] }
   0xa   :  { %v39_v30 = vld [vmem:[#allocation2 + $0x68] sm:$0xff]  ;;  %v40_v32 = vld [vmem:[#allocation2 + $0x70] sm:$0xff]  ;;  %v41_v34 = vld [vmem:[#allocation2 + $0x78] sm:$0xff] }
  0x79   :  { %v46_v5 = vpop.permute.xlu0 %45 }
  0x7a   :  { %v50_v9 = vperm.slane %v46_v5, %v49_v4 }
  0x7c   :  { %v52_v13 = vmul.f32 %v50_v9, %v26_v6  ;;  %v53_v14 = vmul.f32 %v50_v9, %v27_v7  ;;  %v54_v15 = vmul.f32 %v50_v9, %v28_v8  ;;  %v55_v17 = vmul.f32 %v50_v9, %v29_v10 }
  0x7d   :  { %v56_v19 = vmul.f32 %v50_v9, %v30_v11  ;;  %v57_v21 = vmul.f32 %v50_v9, %v31_v12  ;;  %v58_v23 = vmul.f32 %v50_v9, %v32_v16  ;;  %v59_v25 = vmul.f32 %v50_v9, %v33_v18 }
  0x7e   :  { %68 = vst [vmem:[#allocation5] sm:$0xff] %v52_v13  ;;  %v60_v27 = vmul.f32 %v50_v9, %v34_v20  ;;  %v61_v29 = vmul.f32 %v50_v9, %v35_v22  ;;  %v62_v31 = vmul.f32 %v50_v9, %v36_v24  ;;  %v63_v33 = vmul.f32 %v50_v9, %v37_v26 }
  0x7f   :  { %69 = vst [vmem:[#allocation5 + $0x8] sm:$0xff] %v53_v14  ;;  %v64_v35 = vmul.f32 %v50_v9, %v38_v28  ;;  %v65_v36 = vmul.f32 %v50_v9, %v39_v30  ;;  %v66_v37 = vmul.f32 %v50_v9, %v40_v32  ;;  %v67_v38 = vmul.f32 %v50_v9, %v41_v34 }
  0x80   :  { %70 = vst [vmem:[#allocation5 + $0x10] sm:$0xff] %v54_v15 }
  0x81   :  { %71 = vst [vmem:[#allocation5 + $0x18] sm:$0xff] %v55_v17 }
  0x82   :  { %72 = vst [vmem:[#allocation5 + $0x20] sm:$0xff] %v56_v19 }
  0x83   :  { %73 = vst [vmem:[#allocation5 + $0x28] sm:$0xff] %v57_v21 }
  0x84   :  { %74 = vst [vmem:[#allocation5 + $0x30] sm:$0xff] %v58_v23 }
  0x85   :  { %75 = vst [vmem:[#allocation5 + $0x38] sm:$0xff] %v59_v25 }
  0x86   :  { %76 = vst [vmem:[#allocation5 + $0x40] sm:$0xff] %v60_v27 }
  0x87   :  { %77 = vst [vmem:[#allocation5 + $0x48] sm:$0xff] %v61_v29 }
  0x88   :  { %78 = vst [vmem:[#allocation5 + $0x50] sm:$0xff] %v62_v31 }
  0x89   :  { %79 = vst [vmem:[#allocation5 + $0x58] sm:$0xff] %v63_v33 }
  0x8a   :  { %80 = vst [vmem:[#allocation5 + $0x60] sm:$0xff] %v64_v35 }
  0x8b   :  { %81 = vst [vmem:[#allocation5 + $0x68] sm:$0xff] %v65_v36 }
  0x8c   :  { %82 = vst [vmem:[#allocation5 + $0x70] sm:$0xff] %v66_v37 }
  0x8d   :  { %83 = vst [vmem:[#allocation5 + $0x78] sm:$0xff] %v67_v38 }
  0x8e   :  { %94 = dma.vmem_to_hbm [thread:$0]  %s90_s1, 2048, %s92_s18, [#allocation4]  }
  0x8f   :  { %156 = dma.done.wait [#allocation4], 2048  }
  0x90   :  { %157 = vsyncadd [#allocation4], 4294965248 }
  0x91   :  { %99 = vsyncpa [#allocation3], 1 }
  0x92   :  { %100 = vsyncpa [#allocation4], 1 }

</bundles_post_ra>
